<compile_context>
chip_gen: v7x
topology: tpu7x:2x2x1
jax: 0.10.0
libtpu: 0.0.40
codegen_flags: <defaults>
</compile_context>

<pallas_src>
import functools

import jax
import jax.numpy as jnp
from jax.experimental import pallas as pl
from jax.experimental.pallas import tpu as pltpu

_LANE = 128
_MAX_PLANE_BATCH = 32
_FUSE_H_THRESHOLD = 256   # H_in at/above which the per-plane fused path is used


def _round_up(x: int, m: int) -> int:
    return ((x + m - 1) // m) * m


# ----------------------------------------------------------------------------
# Glue: separable interpolation matrices (PyTorch tensor semantics).
#  bilinear: align_corners=False, antialias=False -> src = (dst+0.5)*scale-0.5
#  nearest : src = floor(dst * scale)
# ----------------------------------------------------------------------------
def _interp_matrix(in_size: int, out_size: int, mode: str) -> jnp.ndarray:
    dst = jnp.arange(out_size, dtype=jnp.float32)
    scale = in_size / out_size
    cols = jnp.arange(in_size, dtype=jnp.int32)
    if mode == "nearest":
        src = jnp.clip(jnp.floor(dst * scale).astype(jnp.int32), 0, in_size - 1)
        return (cols[None, :] == src[:, None]).astype(jnp.float32)
    # bilinear
    src = jnp.clip((dst + 0.5) * scale - 0.5, 0.0, float(in_size - 1))
    x0 = jnp.floor(src)
    w1 = src - x0
    x0i = x0.astype(jnp.int32)
    x1i = jnp.minimum(x0i + 1, in_size - 1)
    m = ((cols[None, :] == x0i[:, None]).astype(jnp.float32) * (1.0 - w1)[:, None]
         + (cols[None, :] == x1i[:, None]).astype(jnp.float32) * w1[:, None])
    return m


# ----------------------------------------------------------------------------
# Pallas kernel: P planes (H_in, W_in) -> P planes (H_out, TW) per grid step
# ----------------------------------------------------------------------------
def _resize_block_kernel(wh_ref, wwt_ref, img_ref, out_ref, *, fused):
    blk = img_ref[...]                              # (P, H_in, W_in), input dtype
    p, h_in, w_in = blk.shape
    tw = wwt_ref.shape[1]
    compute_dt = wh_ref.dtype                       # bf16 (float in) or f32 (int in)

    wh = wh_ref[...]                                # (H_out, H_in)
    wwt = wwt_ref[...]                              # (W_in, TW)

    is_int = jnp.issubdtype(out_ref.dtype, jnp.integer)
    if is_int:
        info = jnp.iinfo(out_ref.dtype)
        lo, hi = float(info.min), float(info.max)

    def epilogue_store(q, res_f32):
        if is_int:
            res_f32 = jnp.clip(jnp.round(res_f32), lo, hi)
        out_ref[q] = res_f32.astype(out_ref.dtype)

    if fused:
        # Tall planes: per-plane pass1+pass2 so only one (H_in, TW) intermediate
        # is live at a time (dominant VMEM term for big planes; MXU already full
        # since H_in covers the 256-row MXU).
        for q in range(p):
            xq = blk[q].astype(compute_dt)                                    # (H_in, W_in)
            tq = jnp.dot(xq, wwt, preferred_element_type=jnp.float32)         # (H_in, TW)
            res = jnp.dot(wh, tq.astype(compute_dt),
                          preferred_element_type=jnp.float32)                 # (H_out, TW)
            epilogue_store(q, res)
    else:
        # Pass 1 (W direction): one stacked MXU matmul with M = P*H_in.
        x = blk.astype(compute_dt).reshape(p * h_in, w_in)
        tmp = jnp.dot(x, wwt, preferred_element_type=jnp.float32)             # (P*H_in, TW)
        tmp = tmp.reshape(p, h_in, tw).astype(compute_dt)

        # Pass 2 (H direction): per-plane matmul, stored immediately so only one
        # (H_out, TW) f32 result is live at a time.  NOTE: kept as a static
        # unrolled loop — Mosaic sees/schedules all P matmuls back to back; a
        # broadcast-batched dot_general would need an extra (o,p,w)->(p,o,w)
        # relayout in VMEM.
        for q in range(p):
            res = jnp.dot(wh, tmp[q], preferred_element_type=jnp.float32)     # (H_out, TW)
            epilogue_store(q, res)


# ----------------------------------------------------------------------------
# VMEM sizing / tiling selection (all static, trace-time Python)
# ----------------------------------------------------------------------------
def _vmem_estimate(p, h_in, w_in, h_out, tw, n_w_blocks, in_isz, out_isz, wt_isz, fused):
    in_block = 2 * p * h_in * w_in * in_isz            # double-buffered input DMA
    out_block = 2 * p * h_out * tw * out_isz           # double-buffered output DMA
    wh_buf = h_out * h_in * wt_isz                     # single-buffered (Buffered(1))
    ww_buf = (1 if n_w_blocks == 1 else 2) * w_in * tw * wt_isz
    live_p = 1 if fused else p
    in_cast = live_p * h_in * w_in * wt_isz            # in-kernel cast/reshape copy
    interm = live_p * h_in * tw * (4 + wt_isz)         # f32 tmp + compute-dtype copy
    epilogue = h_out * tw * 4                          # one live per-plane f32 result
    return in_block + in_cast + out_block + wh_buf + ww_buf + interm + epilogue


def _vmem_capacity_bytes():
    try:
        return int(pltpu.get_tpu_info().vmem_capacity_bytes)
    except Exception:
        return 64 << 20                                # conservative (v7x-sized) fallback


def _choose_tiling(n_planes, h_in, w_in, h_out, w_out, in_isz, out_isz, wt_isz,
                   budget, fused, plane_batch=None, w_tile=None):
    """Pick (plane batch P, output-W tile TW, number of W blocks)."""

    def best_p(tw, nwb):
        best = 0
        for p in range(1, min(n_planes, _MAX_PLANE_BATCH) + 1):
            if _vmem_estimate(p, h_in, w_in, h_out, tw, nwb,
                              in_isz, out_isz, wt_isz, fused) <= budget:
                best = p
        return best

    if w_tile is not None:
        cands = [w_out if w_tile >= w_out else min(_round_up(w_tile, _LANE), w_out)]
    else:
        # Full width first (exact-width stores, fewest grid steps), then
        # lane-aligned tiles when the working set must shrink (v7x: 64 MiB VMEM).
        cands = [w_out] + [t for t in (2048, 1024, 512, 256, _LANE) if t < w_out]

    p_blk, tw, nwb = 1, cands[-1], pl.cdiv(w_out, cands[-1])
    for cand in cands:
        c_nwb = pl.cdiv(w_out, cand)
        p = best_p(cand, c_nwb)
        if plane_batch is not None:
            p = max(1, min(plane_batch, n_planes))
        if p >= 1:
            p_blk, tw, nwb = p, cand, c_nwb
            break
    # TODO(synk): if even (P=1, TW=128) exceeds the budget, a W_in-reduction
    # (k-tiled) grid axis is needed; we currently fall through with P=1.

    # Few plane blocks over a very wide output: tile W anyway so the pipeline
    # has enough grid steps to overlap the input/output DMAs.
    if (plane_batch is None and w_tile is None and nwb == 1
            and pl.cdiv(n_planes, p_blk) <= 2 and w_out >= 2048):
        tw = 1024
        nwb = pl.cdiv(w_out, tw)
        p_blk = max(1, best_p(tw, nwb))
    return p_blk, tw, nwb


# ----------------------------------------------------------------------------
# Wrapper
# ----------------------------------------------------------------------------
@functools.partial(jax.jit, static_argnames=("size", "interpolation", "use_bf16_mxu",
                                             "plane_batch", "w_tile", "fuse_planes"))
def pallas_resize(x, size, interpolation="bilinear", use_bf16_mxu=True,
                  plane_batch=None, w_tile=None, fuse_planes=None):
    """Resize x[..., H, W] -> x[..., h_out, w_out]; output dtype == input dtype."""
    if interpolation not in ("bilinear", "nearest"):
        raise ValueError("Only bilinear / nearest interpolation is supported")
    h_out, w_out = int(size[0]), int(size[1])
    *lead, h_in, w_in = x.shape
    n_planes = 1
    for d in lead:
        n_planes *= d
    planes = x.reshape(n_planes, h_in, w_in)        # no dtype cast: minimal HBM traffic

    is_int_in = jnp.issubdtype(x.dtype, jnp.integer)
    # f32 weights / intermediates for integer data (exact round/clip); bf16 otherwise.
    wt_dtype = jnp.float32 if (is_int_in or not use_bf16_mxu) else jnp.bfloat16
    # TODO(synk): nearest mode could skip the MXU with row/col gathers; the 0/1
    # selector matmuls below are correct but do redundant work.
    wh = _interp_matrix(h_in, h_out, interpolation).astype(wt_dtype)     # (H_out, H_in)
    wwt = _interp_matrix(w_in, w_out, interpolation).T.astype(wt_dtype)  # (W_in, W_out)

    out_dtype = x.dtype
    in_isz = jnp.dtype(x.dtype).itemsize
    out_isz = jnp.dtype(out_dtype).itemsize
    wt_isz = jnp.dtype(wt_dtype).itemsize

    fused = (h_in >= _FUSE_H_THRESHOLD) if fuse_planes is None else bool(fuse_planes)

    vmem_cap = _vmem_capacity_bytes()                # 128 MiB (v5e/v6e) or 64 MiB (v7x)
    budget = int(vmem_cap * 0.42)                    # generation-aware working-set budget
    p_blk, tw, n_w_blocks = _choose_tiling(
        n_planes, h_in, w_in, h_out, w_out, in_isz, out_isz, wt_isz,
        budget, fused, plane_batch, w_tile)
    n_p_blocks = pl.cdiv(n_planes, p_blk)

    est = _vmem_estimate(p_blk, h_in, w_in, h_out, tw, n_w_blocks,
                         in_isz, out_isz, wt_isz, fused)
    # Never clamp below the working set; cap just under physical capacity.
    vmem_limit = int(min(max(est + (6 << 20), 32 << 20), int(vmem_cap * 0.92)))

    # Constant-index weights: single-buffer so they don't burn VMEM. Ww^T only
    # stays constant when there is a single W block.
    ww_kwargs = {"pipeline_mode": pl.Buffered(1)} if n_w_blocks == 1 else {}

    kernel = functools.partial(_resize_block_kernel, fused=fused)

    out = pl.pallas_call(
        kernel,
        out_shape=jax.ShapeDtypeStruct((n_planes, h_out, w_out), out_dtype),
        grid_spec=pltpu.PrefetchScalarGridSpec(
            num_scalar_prefetch=0,
            grid=(n_p_blocks, n_w_blocks),
            in_specs=[
                pl.BlockSpec((h_out, h_in), lambda i, j: (0, 0),
                             pipeline_mode=pl.Buffered(1)),                 # Wh (shared)
                pl.BlockSpec((w_in, tw), lambda i, j: (0, j), **ww_kwargs),  # Ww^T tile
                # Plane batch: block index constant across j -> no re-DMA per W tile.
                pl.BlockSpec((p_blk, h_in, w_in), lambda i, j: (i, 0, 0)),
            ],
            # Exact-width output blocks (last dim == full array dim is legal);
            # no padding and no post-kernel slice -> no extra HBM pass.
            out_specs=pl.BlockSpec((p_blk, h_out, tw), lambda i, j: (i, 0, j)),
        ),
        compiler_params=pltpu.CompilerParams(
            dimension_semantics=("parallel", "arbitrary"),
            vmem_limit_bytes=vmem_limit,
        ),
    )(wh, wwt, planes)
    return out.reshape(*lead, h_out, w_out)


class SegmentationResizePallas:
    """Mirrors SegmentationResize.forward: resize img and mask with the same
    interpolation (default bilinear, antialias=False, align_corners=False)."""

    def __init__(self, size, interpolation="bilinear", max_size=None, antialias=None):
        if not isinstance(size, (int, tuple, list)):
            raise TypeError(f"Size should be int or sequence. Got {type(size)}")
        if isinstance(size, (tuple, list)) and len(size) not in (1, 2):
            raise ValueError("If size is a sequence, it should have 1 or 2 values")
        if interpolation not in ("bilinear", "nearest"):
            raise ValueError("Only bilinear / nearest interpolation is supported")
        self.size = size
        self.max_size = max_size
        self.interpolation = interpolation
        self.antialias = antialias  # TODO(synk): antialias=True (area-weighted) path not implemented

    def _target_size(self, h, w):
        size = self.size
        if isinstance(size, (tuple, list)):
            if len(size) == 2:
                return (int(size[0]), int(size[1]))
            size = size[0]
        size = int(size)
        short, long = (w, h) if w <= h else (h, w)
        new_short, new_long = size, int(size * long / short)
        if self.max_size is not None:
            if self.max_size <= size:
                raise ValueError("max_size must be strictly greater than requested size")
            if new_long > self.max_size:
                new_short = int(self.max_size * new_short / new_long)
                new_long = self.max_size
        new_w, new_h = (new_short, new_long) if w <= h else (new_long, new_short)
        return (new_h, new_w)

    def __call__(self, img, mask):
        img_size = self._target_size(img.shape[-2], img.shape[-1])
        mask_size = self._target_size(mask.shape[-2], mask.shape[-1])
        return (
            pallas_resize(img, img_size, self.interpolation),
            pallas_resize(mask, mask_size, self.interpolation),
        )


def _ref_resize(x, size, mode="bilinear"):
    h_out, w_out = size
    wh = _interp_matrix(x.shape[-2], h_out, mode)
    ww = _interp_matrix(x.shape[-1], w_out, mode)
    return jnp.einsum("oh,...hw,qw->...oq", wh, x.astype(jnp.float32), ww)


if __name__ == "__main__":
    key = jax.random.PRNGKey(0)
    k_img, k_mask, k_a, k_b, k_c, k_u8 = jax.random.split(key, 6)

    # 1) Module-level test (NCHW, bilinear).
    img = jax.random.uniform(k_img, (2, 4, 16, 16), dtype=jnp.float32)
    mask = jax.random.uniform(k_mask, (2, 1, 16, 16), dtype=jnp.float32)
    resize = SegmentationResizePallas(size=(8, 8))
    out_img, out_mask = resize(img, mask)
    jax.block_until_ready(out_img)
    jax.block_until_ready(out_mask)
    assert out_img.shape == (2, 4, 8, 8) and out_img.dtype == img.dtype
    assert out_mask.shape == (2, 1, 8, 8) and out_mask.dtype == mask.dtype
    ref = _ref_resize(img, (8, 8))
    assert jnp.allclose(out_img, ref, atol=5e-2), float(jnp.max(jnp.abs(out_img - ref)))

    # 2) Ragged plane batch (5 planes, P=2 -> grid (3, 1), last block masked).
    a = jax.random.uniform(k_a, (1, 5, 16, 16), dtype=jnp.float32)
    out_a = pallas_resize(a, (8, 8), plane_batch=2)
    jax.block_until_ready(out_a)
    assert out_a.shape == (1, 5, 8, 8)
    assert jnp.allclose(out_a, _ref_resize(a, (8, 8)), atol=5e-2)

    # 3) W-tiled output (TW=128, W_out=272 -> 3 W blocks, last one ragged).
    b = jax.random.uniform(k_b, (2, 1, 24, 40), dtype=jnp.float32)
    out_b = pallas_resize(b, (16, 272), w_tile=128)
    jax.block_until_ready(out_b)
    assert out_b.shape == (2, 1, 16, 272)
    assert jnp.allclose(out_b, _ref_resize(b, (16, 272)), atol=5e-2)

    # 4) Fused per-plane path (forced on small planes for coverage).
    c = jax.random.uniform(k_c, (1, 3, 32, 16), dtype=jnp.float32)
    out_c = pallas_resize(c, (8, 8), fuse_planes=True)
    jax.block_until_ready(out_c)
    assert jnp.allclose(out_c, _ref_resize(c, (8, 8)), atol=5e-2)

    # 5) Integer dtype + nearest (exact).
    m8 = (jax.random.uniform(k_u8, (1, 1, 16, 16)) * 255).astype(jnp.uint8)
    out_m8 = pallas_resize(m8, (8, 8), interpolation="nearest")
    jax.block_until_ready(out_m8)
    idx = (jnp.arange(8) * 2).astype(jnp.int32)     # floor(dst * 16/8)
    ref_m8 = m8[..., idx, :][..., :, idx]
    assert out_m8.dtype == jnp.uint8 and bool(jnp.all(out_m8 == ref_m8))

    print("KERNEL_OK")
</pallas_src>

<mosaic_0001>
module attributes {stable_mosaic.version = 11 : i64} {
  func.func @_resize_block_kernel(%arg0: i32, %arg1: i32, %arg2: memref<8x16xbf16, #tpu.memory_space<vmem>>, %arg3: memref<16x8xbf16, #tpu.memory_space<vmem>>, %arg4: memref<8x16x16xf32, #tpu.memory_space<vmem>>, %arg5: memref<8x8x8xf32, #tpu.memory_space<vmem>>) attributes {dimension_semantics = [#tpu.dimension_semantics<parallel>, #tpu.dimension_semantics<arbitrary>], iteration_bounds = array<i64: 1, 1>, scalar_prefetch = 0 : i64, scratch_operands = 0 : i64, tpu.core_type = #tpu.core_type<tc>, window_params = [{pipeline_mode = #tpu.pipeline_mode<synchronous>, transform_indices = @transform_0, window_bounds = array<i64: 8, 16>}, {pipeline_mode = #tpu.pipeline_mode<synchronous>, transform_indices = @transform_1, window_bounds = array<i64: 16, 8>}, {transform_indices = @transform_2, window_bounds = array<i64: 8, 16, 16>}, {transform_indices = @transform_3, window_bounds = array<i64: 8, 8, 8>}]} {
    %c0 = arith.constant 0 : index
    %c0_0 = arith.constant 0 : index
    %c0_1 = arith.constant 0 : index
    %0 = vector.load %arg4[%c0, %c0_0, %c0_1] : memref<8x16x16xf32, #tpu.memory_space<vmem>>, vector<8x16x16xf32>
    %c0_2 = arith.constant 0 : index
    %c0_3 = arith.constant 0 : index
    %1 = vector.load %arg2[%c0_2, %c0_3] : memref<8x16xbf16, #tpu.memory_space<vmem>>, vector<8x16xbf16>
    %c0_4 = arith.constant 0 : index
    %c0_5 = arith.constant 0 : index
    %2 = vector.load %arg3[%c0_4, %c0_5] : memref<16x8xbf16, #tpu.memory_space<vmem>>, vector<16x8xbf16>
    %3 = arith.truncf %0 : vector<8x16x16xf32> to vector<8x16x16xbf16>
    %4 = vector.shape_cast %3 : vector<8x16x16xbf16> to vector<128x16xbf16>
    %cst = arith.constant dense<0.000000e+00> : vector<128x8xf32>
    %5 = tpu.matmul %4, %2, %cst {dimension_numbers = #tpu.dot_dimension_numbers<[1], [0], [0], [1], [0, 0, 1, 1], [], []>} : vector<128x16xbf16>, vector<16x8xbf16>, vector<128x8xf32> -> vector<128x8xf32>
    %6 = vector.shape_cast %5 : vector<128x8xf32> to vector<8x16x8xf32>
    %7 = arith.truncf %6 : vector<8x16x8xf32> to vector<8x16x8xbf16>
    %8 = vector.extract_strided_slice %7 {offsets = [0, 0, 0], sizes = [1, 16, 8], strides = [1, 1, 1]} : vector<8x16x8xbf16> to vector<1x16x8xbf16>
    %9 = vector.shape_cast %8 : vector<1x16x8xbf16> to vector<16x8xbf16>
    %cst_6 = arith.constant dense<0.000000e+00> : vector<8x8xf32>
    %10 = tpu.matmul %1, %9, %cst_6 {dimension_numbers = #tpu.dot_dimension_numbers<[1], [0], [0], [1], [0, 0, 1, 1], [], []>} : vector<8x16xbf16>, vector<16x8xbf16>, vector<8x8xf32> -> vector<8x8xf32>
    %c0_7 = arith.constant 0 : index
    %c0_8 = arith.constant 0 : index
    %c0_9 = arith.constant 0 : index
    %11 = vector.load %arg5[%c0_7, %c0_8, %c0_9] : memref<8x8x8xf32, #tpu.memory_space<vmem>>, vector<1x8x8xf32>
    %12 = vector.shape_cast %11 : vector<1x8x8xf32> to vector<8x8xf32>
    %13 = vector.shape_cast %10 : vector<8x8xf32> to vector<1x8x8xf32>
    tpu.vector_store %arg5[%c0_7, %c0_8, %c0_9], %13 {strides = array<i32>} : memref<8x8x8xf32, #tpu.memory_space<vmem>>, vector<1x8x8xf32>,
    %14 = vector.extract_strided_slice %7 {offsets = [1, 0, 0], sizes = [1, 16, 8], strides = [1, 1, 1]} : vector<8x16x8xbf16> to vector<1x16x8xbf16>
    %15 = vector.shape_cast %14 : vector<1x16x8xbf16> to vector<16x8xbf16>
    %cst_10 = arith.constant dense<0.000000e+00> : vector<8x8xf32>
    %16 = tpu.matmul %1, %15, %cst_10 {dimension_numbers = #tpu.dot_dimension_numbers<[1], [0], [0], [1], [0, 0, 1, 1], [], []>} : vector<8x16xbf16>, vector<16x8xbf16>, vector<8x8xf32> -> vector<8x8xf32>
    %c1 = arith.constant 1 : index
    %c0_11 = arith.constant 0 : index
    %c0_12 = arith.constant 0 : index
    %17 = vector.load %arg5[%c1, %c0_11, %c0_12] : memref<8x8x8xf32, #tpu.memory_space<vmem>>, vector<1x8x8xf32>
    %18 = vector.shape_cast %17 : vector<1x8x8xf32> to vector<8x8xf32>
    %19 = vector.shape_cast %16 : vector<8x8xf32> to vector<1x8x8xf32>
    tpu.vector_store %arg5[%c1, %c0_11, %c0_12], %19 {strides = array<i32>} : memref<8x8x8xf32, #tpu.memory_space<vmem>>, vector<1x8x8xf32>,
    %20 = vector.extract_strided_slice %7 {offsets = [2, 0, 0], sizes = [1, 16, 8], strides = [1, 1, 1]} : vector<8x16x8xbf16> to vector<1x16x8xbf16>
    %21 = vector.shape_cast %20 : vector<1x16x8xbf16> to vector<16x8xbf16>
    %cst_13 = arith.constant dense<0.000000e+00> : vector<8x8xf32>
    %22 = tpu.matmul %1, %21, %cst_13 {dimension_numbers = #tpu.dot_dimension_numbers<[1], [0], [0], [1], [0, 0, 1, 1], [], []>} : vector<8x16xbf16>, vector<16x8xbf16>, vector<8x8xf32> -> vector<8x8xf32>
    %c2 = arith.constant 2 : index
    %c0_14 = arith.constant 0 : index
    %c0_15 = arith.constant 0 : index
    %23 = vector.load %arg5[%c2, %c0_14, %c0_15] : memref<8x8x8xf32, #tpu.memory_space<vmem>>, vector<1x8x8xf32>
    %24 = vector.shape_cast %23 : vector<1x8x8xf32> to vector<8x8xf32>
    %25 = vector.shape_cast %22 : vector<8x8xf32> to vector<1x8x8xf32>
    tpu.vector_store %arg5[%c2, %c0_14, %c0_15], %25 {strides = array<i32>} : memref<8x8x8xf32, #tpu.memory_space<vmem>>, vector<1x8x8xf32>,
    %26 = vector.extract_strided_slice %7 {offsets = [3, 0, 0], sizes = [1, 16, 8], strides = [1, 1, 1]} : vector<8x16x8xbf16> to vector<1x16x8xbf16>
    %27 = vector.shape_cast %26 : vector<1x16x8xbf16> to vector<16x8xbf16>
    %cst_16 = arith.constant dense<0.000000e+00> : vector<8x8xf32>
    %28 = tpu.matmul %1, %27, %cst_16 {dimension_numbers = #tpu.dot_dimension_numbers<[1], [0], [0], [1], [0, 0, 1, 1], [], []>} : vector<8x16xbf16>, vector<16x8xbf16>, vector<8x8xf32> -> vector<8x8xf32>
    %c3 = arith.constant 3 : index
    %c0_17 = arith.constant 0 : index
    %c0_18 = arith.constant 0 : index
    %29 = vector.load %arg5[%c3, %c0_17, %c0_18] : memref<8x8x8xf32, #tpu.memory_space<vmem>>, vector<1x8x8xf32>
    %30 = vector.shape_cast %29 : vector<1x8x8xf32> to vector<8x8xf32>
    %31 = vector.shape_cast %28 : vector<8x8xf32> to vector<1x8x8xf32>
    tpu.vector_store %arg5[%c3, %c0_17, %c0_18], %31 {strides = array<i32>} : memref<8x8x8xf32, #tpu.memory_space<vmem>>, vector<1x8x8xf32>,
    %32 = vector.extract_strided_slice %7 {offsets = [4, 0, 0], sizes = [1, 16, 8], strides = [1, 1, 1]} : vector<8x16x8xbf16> to vector<1x16x8xbf16>
    %33 = vector.shape_cast %32 : vector<1x16x8xbf16> to vector<16x8xbf16>
    %cst_19 = arith.constant dense<0.000000e+00> : vector<8x8xf32>
    %34 = tpu.matmul %1, %33, %cst_19 {dimension_numbers = #tpu.dot_dimension_numbers<[1], [0], [0], [1], [0, 0, 1, 1], [], []>} : vector<8x16xbf16>, vector<16x8xbf16>, vector<8x8xf32> -> vector<8x8xf32>
    %c4 = arith.constant 4 : index
    %c0_20 = arith.constant 0 : index
    %c0_21 = arith.constant 0 : index
    %35 = vector.load %arg5[%c4, %c0_20, %c0_21] : memref<8x8x8xf32, #tpu.memory_space<vmem>>, vector<1x8x8xf32>
    %36 = vector.shape_cast %35 : vector<1x8x8xf32> to vector<8x8xf32>
    %37 = vector.shape_cast %34 : vector<8x8xf32> to vector<1x8x8xf32>
    tpu.vector_store %arg5[%c4, %c0_20, %c0_21], %37 {strides = array<i32>} : memref<8x8x8xf32, #tpu.memory_space<vmem>>, vector<1x8x8xf32>,
    %38 = vector.extract_strided_slice %7 {offsets = [5, 0, 0], sizes = [1, 16, 8], strides = [1, 1, 1]} : vector<8x16x8xbf16> to vector<1x16x8xbf16>
    %39 = vector.shape_cast %38 : vector<1x16x8xbf16> to vector<16x8xbf16>
    %cst_22 = arith.constant dense<0.000000e+00> : vector<8x8xf32>
    %40 = tpu.matmul %1, %39, %cst_22 {dimension_numbers = #tpu.dot_dimension_numbers<[1], [0], [0], [1], [0, 0, 1, 1], [], []>} : vector<8x16xbf16>, vector<16x8xbf16>, vector<8x8xf32> -> vector<8x8xf32>
    %c5 = arith.constant 5 : index
    %c0_23 = arith.constant 0 : index
    %c0_24 = arith.constant 0 : index
    %41 = vector.load %arg5[%c5, %c0_23, %c0_24] : memref<8x8x8xf32, #tpu.memory_space<vmem>>, vector<1x8x8xf32>
    %42 = vector.shape_cast %41 : vector<1x8x8xf32> to vector<8x8xf32>
    %43 = vector.shape_cast %40 : vector<8x8xf32> to vector<1x8x8xf32>
    tpu.vector_store %arg5[%c5, %c0_23, %c0_24], %43 {strides = array<i32>} : memref<8x8x8xf32, #tpu.memory_space<vmem>>, vector<1x8x8xf32>,
    %44 = vector.extract_strided_slice %7 {offsets = [6, 0, 0], sizes = [1, 16, 8], strides = [1, 1, 1]} : vector<8x16x8xbf16> to vector<1x16x8xbf16>
    %45 = vector.shape_cast %44 : vector<1x16x8xbf16> to vector<16x8xbf16>
    %cst_25 = arith.constant dense<0.000000e+00> : vector<8x8xf32>
    %46 = tpu.matmul %1, %45, %cst_25 {dimension_numbers = #tpu.dot_dimension_numbers<[1], [0], [0], [1], [0, 0, 1, 1], [], []>} : vector<8x16xbf16>, vector<16x8xbf16>, vector<8x8xf32> -> vector<8x8xf32>
    %c6 = arith.constant 6 : index
    %c0_26 = arith.constant 0 : index
    %c0_27 = arith.constant 0 : index
    %47 = vector.load %arg5[%c6, %c0_26, %c0_27] : memref<8x8x8xf32, #tpu.memory_space<vmem>>, vector<1x8x8xf32>
    %48 = vector.shape_cast %47 : vector<1x8x8xf32> to vector<8x8xf32>
    %49 = vector.shape_cast %46 : vector<8x8xf32> to vector<1x8x8xf32>
    tpu.vector_store %arg5[%c6, %c0_26, %c0_27], %49 {strides = array<i32>} : memref<8x8x8xf32, #tpu.memory_space<vmem>>, vector<1x8x8xf32>,
    %50 = vector.extract_strided_slice %7 {offsets = [7, 0, 0], sizes = [1, 16, 8], strides = [1, 1, 1]} : vector<8x16x8xbf16> to vector<1x16x8xbf16>
    %51 = vector.shape_cast %50 : vector<1x16x8xbf16> to vector<16x8xbf16>
    %cst_28 = arith.constant dense<0.000000e+00> : vector<8x8xf32>
    %52 = tpu.matmul %1, %51, %cst_28 {dimension_numbers = #tpu.dot_dimension_numbers<[1], [0], [0], [1], [0, 0, 1, 1], [], []>} : vector<8x16xbf16>, vector<16x8xbf16>, vector<8x8xf32> -> vector<8x8xf32>
    %c7 = arith.constant 7 : index
    %c0_29 = arith.constant 0 : index
    %c0_30 = arith.constant 0 : index
    %53 = vector.load %arg5[%c7, %c0_29, %c0_30] : memref<8x8x8xf32, #tpu.memory_space<vmem>>, vector<1x8x8xf32>
    %54 = vector.shape_cast %53 : vector<1x8x8xf32> to vector<8x8xf32>
    %55 = vector.shape_cast %52 : vector<8x8xf32> to vector<1x8x8xf32>
    tpu.vector_store %arg5[%c7, %c0_29, %c0_30], %55 {strides = array<i32>} : memref<8x8x8xf32, #tpu.memory_space<vmem>>, vector<1x8x8xf32>,
    return
  }
  func.func @transform_0(%arg0: i32, %arg1: i32) -> (i32, i32) {
    %c0_i32 = arith.constant 0 : i32
    %c0_i32_0 = arith.constant 0 : i32
    %c0_i32_1 = arith.constant 0 : i32
    return %c0_i32, %c0_i32_0 : i32, i32
  }
  func.func @transform_1(%arg0: i32, %arg1: i32) -> (i32, i32) {
    %c0_i32 = arith.constant 0 : i32
    %c0_i32_0 = arith.constant 0 : i32
    return %c0_i32, %arg1 : i32, i32
  }
  func.func @transform_2(%arg0: i32, %arg1: i32) -> (i32, i32, i32) {
    %c0_i32 = arith.constant 0 : i32
    %c0_i32_0 = arith.constant 0 : i32
    %c0_i32_1 = arith.constant 0 : i32
    return %arg0, %c0_i32, %c0_i32_0 : i32, i32, i32
  }
  func.func @transform_3(%arg0: i32, %arg1: i32) -> (i32, i32, i32) {
    %c0_i32 = arith.constant 0 : i32
    %c0_i32_0 = arith.constant 0 : i32
    return %arg0, %c0_i32, %arg1 : i32, i32, i32
  }
}

</mosaic_0001>

<bundles_post_ra>
// kernel: pallas_resize.1
= control target key start
LH: loop header
LB: loop body
LE: loop exit
PB: predicated region body
PF: predicated region fallthrough
CT: control target
= control target key end

     0   :  { %8 = vsyncpa [#allocation3], 0  ;;  %s806_s0 = inlined_call_operand.vmem [shape: bf16[8,16], index: 0, kind: input, shape index: {}]   ;;  %s807_s1 = inlined_call_operand.vmem [shape: bf16[16,8], index: 1, kind: input, shape index: {}]   ;;  %s808_s2 = inlined_call_operand.hbm [shape: f32[8,16,16], index: 2, kind: input, shape index: {}]   ;;  %s809_s3 = inlined_call_operand.hbm [shape: f32[8,8,8], index: 3, kind: output, shape index: {}]  }
   0x1   :  { %9 = vsyncpa [#allocation4], 0  ;;  %s712_s12 = smov [#allocation2]   ;;  %s664_s16 = scalar_lea.hbm %s808_s2, 2048 }
   0x2   :  { %s19_s13 = sshll.u32 %s712_s12, 4  ;;  %p665_p0 = scmp.ne.s32.totalorder %s808_s2, %s664_s16  ;;  %s20_s13 = int_to_ptr.vmem [resolvable:$true] %s19_s13 }
   0x3   :  { %p668_p1 = scmp.lt.u32.totalorder %s664_s16, %s808_s2 }
   0x5   :  { %p670_p2 = pnand %p668_p1, %p665_p0 }
   0x7   :  { %673 = shalt.err (!%p670_p2)
}
   0x8   :  { %s674_s21 = scalar_lea.vmem %s20_s13, 2048  ;;  %p679_p4 = scmp.lt.s32.totalorder %s20_s13, %s20_s13 }
   0x9   :  { %p675_p3 = scmp.ne.s32.totalorder %s20_s13, %s674_s21  ;;  %p680_p5 = scmp.lt.s32.totalorder %s674_s21, %s674_s21 }
   0xb   :  { %p681_p6 = por %p680_p5, %p679_p4 }
   0xd   :  { %p682_p7 = pnand %p681_p6, %p675_p3 }
   0xf   :  { %685 = shalt.err (!%p682_p7)
}
  0x10   :  { %s713_s22 = smov 128   ;;  %s714_s23 = smov 8  }
  0x11   :  { %25 = dma.hbm_to_vmem [thread:$0]  %s808_s2, 2048, %s20_s13, [#allocation3], %s713_s22, %s713_s22, %s714_s23  }
  0x12   :  { %708 = dma.done.wait [#allocation3], 2048  }
  0x13   :  { %709 = vsyncadd [#allocation3], 4294965248  ;;  %v663_v0 = vld [vmem:[%s807_s1] sm:$0xff]   ;;  %v31_v2 = vld [vmem:[#allocation2 + $0x8] sm:$0xff]  ;;  %vm63_vm0 = vcmask 130048   ;;  %v715_v25 = vmov 0.0  }
  0x14   :  { %v30_v1 = vld [vmem:[#allocation2] sm:$0xff]  ;;  %v32_v3 = vld [vmem:[#allocation2 + $0x10] sm:$0xff]  ;;  %591 = vmatprep.subr.bf16.mxu0 %v663_v0  ;;  %v33_v5 = vld [vmem:[#allocation2 + $0x18] sm:$0xff]  ;;  %609 = vmatprep.subr.bf16.mxu1 %v715_v25  ;;  %vm716_vm1 = vmmov 0   ;;  %vm236_vm2 = vcmask 64512  }
  0x15   :  { %v49_v4 = vpack.c.bf16 %v31_v2, %v30_v1  ;;  %v34_v6 = vld [vmem:[#allocation2 + $0x20] sm:$0xff]  ;;  %v35_v7 = vld [vmem:[#allocation2 + $0x28] sm:$0xff]  ;;  %592 = vmatpush3.bf16.msra.mxu0 %v663_v0  ;;  %v50_v8 = vpack.c.bf16 %v33_v5, %v32_v3  ;;  %v36_v10 = vld [vmem:[#allocation2 + $0x30] sm:$0xff]  ;;  %611 = vmatprep.mubr.msk.bf16.mxu1 %vm716_vm1, %v715_v25 }
  0x16   :  { %v51_v9 = vpack.c.bf16 %v35_v7, %v34_v6  ;;  %v37_v11 = vld [vmem:[#allocation2 + $0x38] sm:$0xff]  ;;  %v38_v12 = vld [vmem:[#allocation2 + $0x40] sm:$0xff]  ;;  %v39_v13 = vld [vmem:[#allocation2 + $0x48] sm:$0xff]  ;;  %633 = vmatprep.subr.bf16.mxu0 %v715_v25 }
  0x17   :  { %593 = vmatprep.mubr.msk.bf16.mxu0 %vm63_vm0, %v49_v4  ;;  %v52_v14 = vpack.c.bf16 %v37_v11, %v36_v10  ;;  %v53_v15 = vpack.c.bf16 %v39_v13, %v38_v12  ;;  %v40_v16 = vld [vmem:[#allocation2 + $0x50] sm:$0xff]  ;;  %v41_v17 = vld [vmem:[#allocation2 + $0x58] sm:$0xff]  ;;  %v42_v18 = vld [vmem:[#allocation2 + $0x60] sm:$0xff] }
  0x18   :  { %594 = vmatmul.mubr.msk.bf16.vlgmr.msra.gmra.mrb[0].mxu0 %vm63_vm0, %v50_v8  ;;  %v43_v19 = vld [vmem:[#allocation2 + $0x68] sm:$0xff]  ;;  %v54_v20 = vpack.c.bf16 %v41_v17, %v40_v16  ;;  %v44_v22 = vld [vmem:[#allocation2 + $0x70] sm:$0xff]  ;;  %v45_v23 = vld [vmem:[#allocation2 + $0x78] sm:$0xff] }
  0x19   :  { %597 = vmatprep.mubr.msk.bf16.mxu0 %vm63_vm0, %v51_v9  ;;  %v55_v21 = vpack.c.bf16 %v43_v19, %v42_v18  ;;  %v56_v24 = vpack.c.bf16 %v45_v23, %v44_v22  ;;  %v46_v32 = vld [vmem:[%s806_s0] sm:$0xf]  ;;  %s717_s0 = smov [#allocation5]  }
  0x1a   :  { %s537_s28 = sshll.u32 %s717_s0, 4  ;;  %s538_s28 = int_to_ptr.vmem [resolvable:$true] %s537_s28 }
  0x1b   :  { %s686_s29 = scalar_lea.vmem %s538_s28, 1024  ;;  %p691_p9 = scmp.lt.s32.totalorder %s538_s28, %s538_s28 }
  0x1c   :  { %p687_p8 = scmp.ne.s32.totalorder %s538_s28, %s686_s29  ;;  %p692_p10 = scmp.lt.s32.totalorder %s686_s29, %s686_s29 }
  0x1e   :  { %p693_p11 = por %p692_p10, %p691_p9 }
  0x20   :  { %598 = vmatmul.mubr.msk.bf16.gmra.mrb[4].mxu0 %vm63_vm0, %v52_v14  ;;  %p694_p12 = pnand %p693_p11, %p687_p8 }
  0x21   :  { %601 = vmatprep.mubr.msk.bf16.mxu0 %vm63_vm0, %v53_v15 }
  0x28   :  { %602 = vmatmul.mubr.msk.bf16.gmra.mrb[8].mxu0 %vm63_vm0, %v54_v20 }
  0x29   :  { %605 = vmatprep.mubr.msk.bf16.mxu0 %vm63_vm0, %v55_v21 }
  0x30   :  { %606 = vmatmul.mubr.msk.bf16.gmra.mrb[12].mxu0 %vm63_vm0, %v56_v24 }
  0x31   :  { %635 = vmatprep.mubr.msk.bf16.mxu0 %vm716_vm1, %v715_v25 }
  0xeb   :  { %v595_v26 = vpop.f32.mrb[0].mxu0 }
  0xec   :  { %v122_v27 = vpop.f32.mrb[1].mxu0 }
  0xed   :  { %v596_v28 = vpop.f32.mrb[2].mxu0 }
  0xee   :  { %v186_v29 = vpack.c.bf16 %v596_v28, %v595_v26  ;;  %v125_v30 = vpop.f32.mrb[3].mxu0 }
  0xef   :  { %v185_v31 = vpack.c.bf16 %v125_v30, %v122_v27 }
  0xf1   :  { %610 = vmatpush3.bf16.msra.mxu1 %v185_v31 }
  0xf2   :  { %615 = vmatprep.subr.bf16.mxu1 %v715_v25 }
  0xf3   :  { %v599_v33 = vpop.f32.mrb[4].mxu0 }
  0xf4   :  { %v138_v34 = vpop.f32.mrb[5].mxu0  ;;  %612 = vmatmul.mubr.msk.bf16.vlgmr.msra.gmra.mrb[0].mxu1 %vm63_vm0, %v46_v32 }
  0xf5   :  { %v600_v35 = vpop.f32.mrb[6].mxu0  ;;  %616 = vmatpush3.bf16.msra.mxu1 %v186_v29  ;;  %617 = vmatprep.mubr.msk.bf16.mxu1 %vm716_vm1, %v715_v25 }
  0xf6   :  { %v188_v36 = vpack.c.bf16 %v600_v35, %v599_v33  ;;  %v141_v37 = vpop.f32.mrb[7].mxu0  ;;  %621 = vmatprep.subr.bf16.mxu1 %v715_v25 }
  0xf7   :  { %v187_v38 = vpack.c.bf16 %v141_v37, %v138_v34 }
  0xfb   :  { %v603_v39 = vpop.f32.mrb[8].mxu0 }
  0xfc   :  { %v154_v40 = vpop.f32.mrb[9].mxu0  ;;  %618 = vmatmul.mubr.msk.bf16.vlgmr.msra.gmra.mrb[4].mxu1 %vm63_vm0, %v46_v32 }
  0xfd   :  { %622 = vmatpush3.bf16.msra.mxu1 %v187_v38  ;;  %v604_v41 = vpop.f32.mrb[10].mxu0  ;;  %623 = vmatprep.mubr.msk.bf16.mxu1 %vm716_vm1, %v715_v25 }
  0xfe   :  { %v190_v42 = vpack.c.bf16 %v604_v41, %v603_v39  ;;  %v157_v43 = vpop.f32.mrb[11].mxu0  ;;  %627 = vmatprep.subr.bf16.mxu1 %v715_v25 }
  0xff   :  { %v189_v44 = vpack.c.bf16 %v157_v43, %v154_v40 }
 0x101   :  { %634 = vmatpush3.bf16.msra.mxu0 %v189_v44 }
 0x102   :  { %645 = vmatprep.subr.bf16.mxu0 %v715_v25 }
 0x103   :  { %v607_v45 = vpop.f32.mrb[12].mxu0 }
 0x104   :  { %624 = vmatmul.mubr.msk.bf16.vlgmr.msra.gmra.mrb[8].mxu1 %vm63_vm0, %v46_v32  ;;  %v170_v46 = vpop.f32.mrb[13].mxu0  ;;  %636 = vmatmul.mubr.msk.bf16.vlgmr.msra.gmra.mrb[16].mxu0 %vm63_vm0, %v46_v32 }
 0x105   :  { %628 = vmatpush3.bf16.msra.mxu1 %v188_v36  ;;  %629 = vmatprep.mubr.msk.bf16.mxu1 %vm716_vm1, %v715_v25  ;;  %v608_v47 = vpop.f32.mrb[14].mxu0 }
 0x106   :  { %639 = vmatprep.subr.bf16.mxu1 %v715_v25  ;;  %v192_v48 = vpack.c.bf16 %v608_v47, %v607_v45  ;;  %v173_v49 = vpop.f32.mrb[15].mxu0  ;;  %647 = vmatprep.mubr.msk.bf16.mxu0 %vm716_vm1, %v715_v25 }
 0x107   :  { %v191_v50 = vpack.c.bf16 %v173_v49, %v170_v46 }
 0x109   :  { %646 = vmatpush3.bf16.msra.mxu0 %v191_v50 }
 0x10c   :  { %630 = vmatmul.mubr.msk.bf16.vlgmr.msra.gmra.mrb[12].mxu1 %vm63_vm0, %v46_v32  ;;  %648 = vmatmul.mubr.msk.bf16.vlgmr.msra.gmra.mrb[20].mxu0 %vm63_vm0, %v46_v32 }
 0x10d   :  { %640 = vmatpush3.bf16.msra.mxu1 %v190_v42  ;;  %641 = vmatprep.mubr.msk.bf16.mxu1 %vm716_vm1, %v715_v25 }
 0x10e   :  { %651 = vmatprep.subr.bf16.mxu1 %v715_v25 }
 0x114   :  { %642 = vmatmul.mubr.msk.bf16.vlgmr.msra.gmra.mrb[16].mxu1 %vm63_vm0, %v46_v32 }
 0x115   :  { %652 = vmatpush3.bf16.msra.mxu1 %v192_v48  ;;  %653 = vmatprep.mubr.msk.bf16.mxu1 %vm716_vm1, %v715_v25 }
 0x11c   :  { %654 = vmatmul.mubr.msk.bf16.vlgmr.msra.gmra.mrb[20].mxu1 %vm63_vm0, %v46_v32 }
 0x1c7   :  { %v230_v51 = vpop.f32.mrb[0].mxu1 }
 0x1c8   :  { %237 = vst.msk [vmem:[#allocation5] sm:$0xff] %vm236_vm2, %v230_v51  ;;  %v613_v52 = vpop.f32.mrb[1].mxu1 }
 0x1c9   :  { %v233_v53 = vpop.f32.mrb[2].mxu1 }
 0x1ca   :  { %v614_v54 = vpop.f32.mrb[3].mxu1 }
 0x1cf   :  { %v272_v55 = vpop.f32.mrb[4].mxu1 }
 0x1d0   :  { %279 = vst.msk [vmem:[#allocation5 + $0x8] sm:$0xff] %vm236_vm2, %v272_v55  ;;  %v619_v56 = vpop.f32.mrb[5].mxu1 }
 0x1d1   :  { %v275_v57 = vpop.f32.mrb[6].mxu1 }
 0x1d2   :  { %v620_v58 = vpop.f32.mrb[7].mxu1 }
 0x1d7   :  { %v314_v59 = vpop.f32.mrb[8].mxu1  ;;  %v398_v60 = vpop.f32.mrb[16].mxu0 }
 0x1d8   :  { %321 = vst.msk [vmem:[#allocation5 + $0x10] sm:$0xff] %vm236_vm2, %v314_v59  ;;  %v625_v61 = vpop.f32.mrb[9].mxu1  ;;  %405 = vst.msk [vmem:[#allocation5 + $0x20] sm:$0xff] %vm236_vm2, %v398_v60  ;;  %v637_v62 = vpop.f32.mrb[17].mxu0 }
 0x1d9   :  { %v317_v63 = vpop.f32.mrb[10].mxu1  ;;  %v401_v0 = vpop.f32.mrb[18].mxu0 }
 0x1da   :  { %v626_v1 = vpop.f32.mrb[11].mxu1  ;;  %v638_v2 = vpop.f32.mrb[19].mxu0 }
 0x1df   :  { %v356_v3 = vpop.f32.mrb[12].mxu1  ;;  %v482_v4 = vpop.f32.mrb[20].mxu0 }
 0x1e0   :  { %363 = vst.msk [vmem:[#allocation5 + $0x18] sm:$0xff] %vm236_vm2, %v356_v3  ;;  %v631_v5 = vpop.f32.mrb[13].mxu1  ;;  %489 = vst.msk [vmem:[#allocation5 + $0x30] sm:$0xff] %vm236_vm2, %v482_v4  ;;  %v649_v6 = vpop.f32.mrb[21].mxu0 }
 0x1e1   :  { %v359_v7 = vpop.f32.mrb[14].mxu1  ;;  %v485_v8 = vpop.f32.mrb[22].mxu0 }
 0x1e2   :  { %v632_v9 = vpop.f32.mrb[15].mxu1  ;;  %v650_v10 = vpop.f32.mrb[23].mxu0 }
 0x1e7   :  { %v440_v11 = vpop.f32.mrb[16].mxu1 }
 0x1e8   :  { %447 = vst.msk [vmem:[#allocation5 + $0x28] sm:$0xff] %vm236_vm2, %v440_v11  ;;  %v643_v12 = vpop.f32.mrb[17].mxu1 }
 0x1e9   :  { %v443_v13 = vpop.f32.mrb[18].mxu1 }
 0x1ea   :  { %v644_v14 = vpop.f32.mrb[19].mxu1 }
 0x1ef   :  { %v524_v15 = vpop.f32.mrb[20].mxu1 }
 0x1f0   :  { %531 = vst.msk [vmem:[#allocation5 + $0x38] sm:$0xff] %vm236_vm2, %v524_v15  ;;  %v655_v16 = vpop.f32.mrb[21].mxu1 }
 0x1f1   :  { %v527_v17 = vpop.f32.mrb[22].mxu1 }
 0x1f2   :  { %697 = shalt.err (!%p694_p12)
}
 0x1f3   :  { %s698_s5 = scalar_lea.hbm %s809_s3, 1024 }
 0x1f4   :  { %p699_p13 = scmp.ne.s32.totalorder %s809_s3, %s698_s5  ;;  %p702_p0 = scmp.lt.u32.totalorder %s698_s5, %s809_s3 }
 0x1f6   :  { %p704_p1 = pnand %p702_p0, %p699_p13 }
 0x1f8   :  { %707 = shalt.err (!%p704_p1)
}
 0x1f9   :  { %543 = dma.vmem_to_hbm [thread:$0]  %s538_s28, 1024, %s809_s3, [#allocation4], %s713_s22, %s713_s22, %s714_s23   ;;  %v656_v18 = vpop.f32.mrb[23].mxu1 }
 0x1fa   :  { %710 = dma.done.wait [#allocation4], 1024  }
 0x1fb   :  { %711 = vsyncadd [#allocation4], 4294966272 }
 0x1fc   :  { %547 = vsyncpa [#allocation3], 1 }
 0x1fd   :  { %548 = vsyncpa [#allocation4], 1 }

</bundles_post_ra>
